<compile_context>
chip_gen: v7x
topology: tpu7x:2x2x1
jax: 0.10.0
libtpu: 0.0.40
codegen_flags: <defaults>
</compile_context>

<pallas_src>
import functools

import jax
import jax.numpy as jnp
import numpy as np
from jax import lax
from jax.experimental import pallas as pl
from jax.experimental.pallas import tpu as pltpu


def _eq_conv_kernel(x_ref, w_ref, o_ref, col_ref, *, Cin, KH, KW, Wp, M):
    """Single-step kernel (no grid); the whole (tiny) problem is VMEM-resident.

    x_ref:   (Cin, Mext)        lane-dense padded activations, Mext >= M + halo tail
    w_ref:   (Cout, KH*KW*Cin)  scale-folded weight, columns ordered (kh, kw, cin)
    o_ref:   (Cout, M)          f32 output slab, M = N*Hp*Wp on the lane axis
    col_ref: (KH*KW*Cin, M)     im2col scratch: K on sublanes, M on lanes
    """
    x = x_ref[...]                                    # (Cin, Mext), lane-dense

    # im2col: each tap is a static lane-offset slice of the flattened padded
    # activations (positions that run past a row/batch boundary only feed
    # output pixels the wrapper crops away).  Each tap is stored into its
    # static row window of the scratch slab -> no value-level concatenation,
    # no lane-placement/select passes, low vreg pressure.
    for kh in range(KH):
        for kw in range(KW):
            k = kh * KW + kw
            off = kh * Wp + kw
            col_ref[k * Cin:(k + 1) * Cin, :] = x[:, off:off + M]

    # One MXU matmul with the fat contraction K = KH*KW*Cin on col's sublane
    # axis; result minor dim is M (lane-dense store), f32 accumulation.
    o_ref[...] = jnp.dot(w_ref[...], col_ref[...],
                         preferred_element_type=jnp.float32)


def equalized_conv2d(x_nchw, weight_oihw, *, stride=1, padding=1, gain=2):
    """Forward of EqualizedConvLayer: conv2d(x * scale, W), no bias."""
    assert stride == 1, "Only stride=1 (module default) is implemented."
    N, Cin, H, W = x_nchw.shape
    Cout, Cin_w, KH, KW = weight_oihw.shape
    assert Cin == Cin_w

    Hp, Wp = H + 2 * padding, W + 2 * padding
    Ho, Wo = Hp - KH + 1, Wp - KW + 1
    M = N * Hp * Wp                                   # full padded output grid
    tail = (KH - 1) * Wp + (KW - 1)                   # largest im2col lane offset
    Mext = ((M + tail + 127) // 128) * 128            # lane-aligned input width

    scale = float((gain / (Cin * KH * KW)) ** 0.5)

    # --- layout plumbing: one fused XLA pass each way -------------------------
    # NCHW -> (Cin, N, Hp, Wp) with the zero halo applied here (no in-kernel
    # padding), flattened to a lane-dense (Cin, Mext) slab for the kernel.
    # TODO(synk): for chained ProGAN layers keep activations in this slab form
    #             across layers and convert at the model boundary only, so the
    #             boundary transposes are not paid per layer.
    x_pad = jnp.pad(jnp.transpose(x_nchw, (1, 0, 2, 3)),
                    ((0, 0), (0, 0), (padding, padding), (padding, padding)))
    x_flat = jnp.pad(x_pad.reshape(Cin, M), ((0, 0), (0, Mext - M)))

    # Fold the equalized-LR scale into the (tiny) weight; conv is linear so the
    # result is identical, and this removes any per-activation scaling pass.
    # Cast to the activation dtype so bf16 operands stay bf16 into the MXU.
    w_flat = (jnp.transpose(weight_oihw, (0, 2, 3, 1)) * scale
              ).reshape(Cout, KH * KW * Cin).astype(x_nchw.dtype)

    kernel = functools.partial(
        _eq_conv_kernel, Cin=Cin, KH=KH, KW=KW, Wp=Wp, M=M)

    # Whole problem in a single grid-less step (~0.3 MFLOP): one MXU matmul,
    # lane-dense loads/stores, no per-step pipeline overhead.
    # TODO(synk): for production layer sizes add a "parallel" grid axis over M
    #             (uses both v7x TensorCores), accumulate per-tap K=Cin dots
    #             into an f32 VMEM scratch instead of materializing the
    #             KH*KW-times larger im2col slab, and re-budget
    #             vmem_limit_bytes for v7x's 64 MiB VMEM.
    out_full = pl.pallas_call(
        kernel,
        out_shape=jax.ShapeDtypeStruct((Cout, M), jnp.float32),
        in_specs=[
            pl.BlockSpec(memory_space=pltpu.MemorySpace.VMEM),
            pl.BlockSpec(memory_space=pltpu.MemorySpace.VMEM),
        ],
        out_specs=pl.BlockSpec(memory_space=pltpu.MemorySpace.VMEM),
        scratch_shapes=[pltpu.VMEM((KH * KW * Cin, M), x_nchw.dtype)],
        compiler_params=pltpu.CompilerParams(
            vmem_limit_bytes=32 * 1024 * 1024),
    )(x_flat, w_flat)

    # Crop the halo rows/cols, cast back to the module dtype and return NCHW
    # (one fused slice+transpose+cast XLA op).
    out = out_full.reshape(Cout, N, Hp, Wp)[:, :, :Ho, :Wo]
    return jnp.transpose(out, (1, 0, 2, 3)).astype(x_nchw.dtype)


def _reference(x_nchw, weight_oihw, *, padding=1, gain=2):
    Cin, KH, KW = weight_oihw.shape[1], weight_oihw.shape[2], weight_oihw.shape[3]
    scale = (gain / (Cin * KH * KW)) ** 0.5
    return lax.conv_general_dilated(
        x_nchw * scale, weight_oihw,
        window_strides=(1, 1),
        padding=((padding, padding), (padding, padding)),
        dimension_numbers=("NCHW", "OIHW", "NCHW"),
    )


if __name__ == "__main__":
    # Module config consistent with the forward: in=4, out=8, k=3, s=1, p=1.
    N, Cin, H, W = 2, 4, 16, 16
    Cout, K = 8, 3

    key = jax.random.PRNGKey(0)
    kx, kw = jax.random.split(key)
    x = jax.random.normal(kx, (N, Cin, H, W), dtype=jnp.float32)
    # nn.init.normal_(self.conv.weight) -> standard normal weights (OIHW).
    weight = jax.random.normal(kw, (Cout, Cin, K, K), dtype=jnp.float32)
    # bias = zeros(Cout) exists on the module but is never added in forward().

    out = jax.block_until_ready(
        equalized_conv2d(x, weight, stride=1, padding=1, gain=2))

    ref = jax.block_until_ready(_reference(x, weight, padding=1, gain=2))
    np.testing.assert_allclose(np.asarray(out), np.asarray(ref),
                               rtol=1e-4, atol=1e-4)

    print("KERNEL_OK")
</pallas_src>

<mosaic_0001>
module attributes {stable_mosaic.version = 11 : i64} {
  func.func @_eq_conv_kernel(%arg0: memref<4x768xf32, #tpu.memory_space<vmem>>, %arg1: memref<8x36xf32, #tpu.memory_space<vmem>>, %arg2: memref<8x648xf32, #tpu.memory_space<vmem>>, %arg3: memref<36x648xf32, #tpu.memory_space<vmem>>) attributes {dimension_semantics = [], scalar_prefetch = 0 : i64, scratch_operands = 1 : i64, tpu.core_type = #tpu.core_type<tc>} {
    %c0 = arith.constant 0 : index
    %c0_0 = arith.constant 0 : index
    %0 = vector.load %arg0[%c0, %c0_0] : memref<4x768xf32, #tpu.memory_space<vmem>>, vector<4x768xf32>
    %1 = vector.extract_strided_slice %0 {offsets = [0, 0], sizes = [4, 648], strides = [1, 1]} : vector<4x768xf32> to vector<4x648xf32>
    %c0_1 = arith.constant 0 : index
    %c0_2 = arith.constant 0 : index
    %2 = vector.load %arg3[%c0_1, %c0_2] : memref<36x648xf32, #tpu.memory_space<vmem>>, vector<4x648xf32>
    tpu.vector_store %arg3[%c0_1, %c0_2], %1 {strides = array<i32>} : memref<36x648xf32, #tpu.memory_space<vmem>>, vector<4x648xf32>,
    %3 = vector.extract_strided_slice %0 {offsets = [0, 1], sizes = [4, 648], strides = [1, 1]} : vector<4x768xf32> to vector<4x648xf32>
    %c4 = arith.constant 4 : index
    %c0_3 = arith.constant 0 : index
    %4 = vector.load %arg3[%c4, %c0_3] : memref<36x648xf32, #tpu.memory_space<vmem>>, vector<4x648xf32>
    tpu.vector_store %arg3[%c4, %c0_3], %3 {strides = array<i32>} : memref<36x648xf32, #tpu.memory_space<vmem>>, vector<4x648xf32>,
    %5 = vector.extract_strided_slice %0 {offsets = [0, 2], sizes = [4, 648], strides = [1, 1]} : vector<4x768xf32> to vector<4x648xf32>
    %c8 = arith.constant 8 : index
    %c0_4 = arith.constant 0 : index
    %6 = vector.load %arg3[%c8, %c0_4] : memref<36x648xf32, #tpu.memory_space<vmem>>, vector<4x648xf32>
    tpu.vector_store %arg3[%c8, %c0_4], %5 {strides = array<i32>} : memref<36x648xf32, #tpu.memory_space<vmem>>, vector<4x648xf32>,
    %7 = vector.extract_strided_slice %0 {offsets = [0, 18], sizes = [4, 648], strides = [1, 1]} : vector<4x768xf32> to vector<4x648xf32>
    %c12 = arith.constant 12 : index
    %c0_5 = arith.constant 0 : index
    %8 = vector.load %arg3[%c12, %c0_5] : memref<36x648xf32, #tpu.memory_space<vmem>>, vector<4x648xf32>
    tpu.vector_store %arg3[%c12, %c0_5], %7 {strides = array<i32>} : memref<36x648xf32, #tpu.memory_space<vmem>>, vector<4x648xf32>,
    %9 = vector.extract_strided_slice %0 {offsets = [0, 19], sizes = [4, 648], strides = [1, 1]} : vector<4x768xf32> to vector<4x648xf32>
    %c16 = arith.constant 16 : index
    %c0_6 = arith.constant 0 : index
    %10 = vector.load %arg3[%c16, %c0_6] : memref<36x648xf32, #tpu.memory_space<vmem>>, vector<4x648xf32>
    tpu.vector_store %arg3[%c16, %c0_6], %9 {strides = array<i32>} : memref<36x648xf32, #tpu.memory_space<vmem>>, vector<4x648xf32>,
    %11 = vector.extract_strided_slice %0 {offsets = [0, 20], sizes = [4, 648], strides = [1, 1]} : vector<4x768xf32> to vector<4x648xf32>
    %c20 = arith.constant 20 : index
    %c0_7 = arith.constant 0 : index
    %12 = vector.load %arg3[%c20, %c0_7] : memref<36x648xf32, #tpu.memory_space<vmem>>, vector<4x648xf32>
    tpu.vector_store %arg3[%c20, %c0_7], %11 {strides = array<i32>} : memref<36x648xf32, #tpu.memory_space<vmem>>, vector<4x648xf32>,
    %13 = vector.extract_strided_slice %0 {offsets = [0, 36], sizes = [4, 648], strides = [1, 1]} : vector<4x768xf32> to vector<4x648xf32>
    %c24 = arith.constant 24 : index
    %c0_8 = arith.constant 0 : index
    %14 = vector.load %arg3[%c24, %c0_8] : memref<36x648xf32, #tpu.memory_space<vmem>>, vector<4x648xf32>
    tpu.vector_store %arg3[%c24, %c0_8], %13 {strides = array<i32>} : memref<36x648xf32, #tpu.memory_space<vmem>>, vector<4x648xf32>,
    %15 = vector.extract_strided_slice %0 {offsets = [0, 37], sizes = [4, 648], strides = [1, 1]} : vector<4x768xf32> to vector<4x648xf32>
    %c28 = arith.constant 28 : index
    %c0_9 = arith.constant 0 : index
    %16 = vector.load %arg3[%c28, %c0_9] : memref<36x648xf32, #tpu.memory_space<vmem>>, vector<4x648xf32>
    tpu.vector_store %arg3[%c28, %c0_9], %15 {strides = array<i32>} : memref<36x648xf32, #tpu.memory_space<vmem>>, vector<4x648xf32>,
    %17 = vector.extract_strided_slice %0 {offsets = [0, 38], sizes = [4, 648], strides = [1, 1]} : vector<4x768xf32> to vector<4x648xf32>
    %c32 = arith.constant 32 : index
    %c0_10 = arith.constant 0 : index
    %18 = vector.load %arg3[%c32, %c0_10] : memref<36x648xf32, #tpu.memory_space<vmem>>, vector<4x648xf32>
    tpu.vector_store %arg3[%c32, %c0_10], %17 {strides = array<i32>} : memref<36x648xf32, #tpu.memory_space<vmem>>, vector<4x648xf32>,
    %c0_11 = arith.constant 0 : index
    %c0_12 = arith.constant 0 : index
    %19 = vector.load %arg1[%c0_11, %c0_12] : memref<8x36xf32, #tpu.memory_space<vmem>>, vector<8x36xf32>
    %c0_13 = arith.constant 0 : index
    %c0_14 = arith.constant 0 : index
    %20 = vector.load %arg3[%c0_13, %c0_14] : memref<36x648xf32, #tpu.memory_space<vmem>>, vector<36x648xf32>
    %cst = arith.constant dense<0.000000e+00> : vector<8x648xf32>
    %21 = tpu.matmul %19, %20, %cst {dimension_numbers = #tpu.dot_dimension_numbers<[1], [0], [0], [1], [0, 0, 1, 1], [], []>} : vector<8x36xf32>, vector<36x648xf32>, vector<8x648xf32> -> vector<8x648xf32>
    %c0_15 = arith.constant 0 : index
    %c0_16 = arith.constant 0 : index
    %22 = vector.load %arg2[%c0_15, %c0_16] : memref<8x648xf32, #tpu.memory_space<vmem>>, vector<8x648xf32>
    tpu.vector_store %arg2[%c0_15, %c0_16], %21 {strides = array<i32>} : memref<8x648xf32, #tpu.memory_space<vmem>>, vector<8x648xf32>,
    return
  }
}

</mosaic_0001>

<bundles_post_ra>
// kernel: tpu_custom_call.1
= control target key start
LH: loop header
LB: loop body
LE: loop exit
PB: predicated region body
PF: predicated region fallthrough
CT: control target
= control target key end

     0   :  { %7 = vsyncpa [#allocation4], 0  ;;  %s941_s0 = inlined_call_operand.hbm [shape: f32[4,768], index: 0, kind: input, shape index: {}]   ;;  %s942_s1 = inlined_call_operand.hbm [shape: f32[8,36], index: 1, kind: input, shape index: {}]   ;;  %s943_s2 = inlined_call_operand.hbm [shape: f32[8,648], index: 2, kind: output, shape index: {}]  }
   0x1   :  { %8 = vsyncpa [#allocation7], 0 }
   0x2   :  { %9 = vsyncpa [#allocation5], 0  ;;  %s712_s9 = smov [#allocation3]   ;;  %s713_s11 = smov [#allocation6]  }
   0x3   :  { %s16_s10 = sshll.u32 %s712_s9, 4  ;;  %s26_s12 = sshll.u32 %s713_s11, 4  ;;  %s17_s10 = int_to_ptr.vmem [resolvable:$true] %s16_s10  ;;  %s27_s12 = int_to_ptr.vmem [resolvable:$true] %s26_s12 }
   0x4   :  { %s640_s15 = scalar_lea.hbm %s941_s0, 384 }
   0x5   :  { %p641_p0 = scmp.ne.s32.totalorder %s941_s0, %s640_s15  ;;  %p644_p1 = scmp.lt.u32.totalorder %s640_s15, %s941_s0 }
   0x7   :  { %p646_p2 = pnand %p644_p1, %p641_p0 }
   0x9   :  { %649 = shalt.err (!%p646_p2)
}
   0xa   :  { %s650_s20 = scalar_lea.vmem %s17_s10, 384  ;;  %p655_p4 = scmp.lt.s32.totalorder %s17_s10, %s17_s10 }
   0xb   :  { %p651_p3 = scmp.ne.s32.totalorder %s17_s10, %s650_s20  ;;  %p656_p5 = scmp.lt.s32.totalorder %s650_s20, %s650_s20 }
   0xd   :  { %p657_p6 = por %p656_p5, %p655_p4 }
   0xf   :  { %p658_p7 = pnand %p657_p6, %p651_p3 }
  0x11   :  { %661 = shalt.err (!%p658_p7)
}
  0x12   :  { %19 = dma.hbm_to_vmem [thread:$0]  %s941_s0, 384, %s17_s10, [#allocation4]  }
  0x13   :  { %s662_s25 = scalar_lea.hbm %s942_s1, 128 }
  0x14   :  { %p663_p8 = scmp.ne.s32.totalorder %s942_s1, %s662_s25  ;;  %p666_p9 = scmp.lt.u32.totalorder %s662_s25, %s942_s1 }
  0x16   :  { %p668_p10 = pnand %p666_p9, %p663_p8 }
  0x18   :  { %671 = shalt.err (!%p668_p10)
}
  0x19   :  { %s672_s30 = scalar_lea.vmem %s27_s12, 128  ;;  %p677_p12 = scmp.lt.s32.totalorder %s27_s12, %s27_s12 }
  0x1a   :  { %p673_p11 = scmp.ne.s32.totalorder %s27_s12, %s672_s30  ;;  %p678_p13 = scmp.lt.s32.totalorder %s672_s30, %s672_s30 }
  0x1c   :  { %p679_p0 = por %p678_p13, %p677_p12 }
  0x1e   :  { %p680_p1 = pnand %p679_p0, %p673_p11 }
  0x20   :  { %683 = shalt.err (!%p680_p1)
}
  0x21   :  { %29 = dma.hbm_to_vmem [thread:$0]  %s942_s1, 128, %s27_s12, [#allocation7]  }
  0x22   :  { %706 = dma.done.wait [#allocation4], 384  }
  0x23   :  { %707 = vsyncadd [#allocation4], 4294966912 }
  0x24   :  { %708 = dma.done.wait [#allocation7], 128  }
  0x25   :  { %709 = vsyncadd [#allocation7], 4294967168  ;;  %v763_v0 = vld [vmem:[#allocation3 + $0x8] sm:$0xff]  ;;  %v36_v1 = vld [vmem:[#allocation3] sm:$0xff]  ;;  %s714_s4 = smov 126   ;;  %s715_s5 = smov 127  }
  0x26   :  { %v765_v2 = vld [vmem:[#allocation3 + $0x10] sm:$0xff]  ;;  %93 = vrot.lane.b32.xlu1 %v763_v0, %s714_s4  ;;  %50 = vst [vmem:[#allocation2 + $0x10] sm:$0xf] %v763_v0  ;;  %60 = vrot.lane.b32.xlu0 %v36_v1, %s715_s5  ;;  %48 = vst [vmem:[#allocation2] sm:$0xf] %v36_v1  ;;  %v42_v3 = vcombine.high %v36_v1, %v36_v1  ;;  %v43_v4 = vcombine.high %v763_v0, %v763_v0  ;;  %s716_s1 = smov 110  }
  0x27   :  { %52 = vst [vmem:[#allocation2 + $0x20] sm:$0xf] %v765_v2  ;;  %v56_v5 = vcombine.low %v763_v0, %v763_v0  ;;  %v55_v6 = vcombine.low %v36_v1, %v36_v1  ;;  %s717_s6 = smov 109   ;;  %s718_s7 = smov 108   ;;  %v57_v7 = vcombine.low %v765_v2, %v765_v2  ;;  %v44_v8 = vcombine.high %v765_v2, %v765_v2 }
  0x28   :  { %49 = vst [vmem:[#allocation2 + $0x8] sm:$0xf] %v42_v3  ;;  %51 = vst [vmem:[#allocation2 + $0x18] sm:$0xf] %v43_v4  ;;  %s719_s8 = smov 92   ;;  %s720_s9 = smov 91  }
  0x29   :  { %vm53_vm0 = vcmask 60416   ;;  %s721_s10 = smov 90   ;;  %v722_v9 = vmov 0.0   ;;  %vm101_vm1 = vcmask 1031168   ;;  %vm70_vm2 = vcmask 1039360   ;;  %s723_s11 = smov [#allocation8]  }
  0x2a   :  { %121 = vrot.lane.b32.xlu0 %v36_v1, %s716_s1  ;;  %91 = vrot.lane.b32.xlu1 %v42_v3, %s714_s4  ;;  %54 = vst.msk [vmem:[#allocation2 + $0x28] sm:$0xf] %vm53_vm0, %v44_v8  ;;  %vm131_vm3 = vcmask 900096   ;;  %vm161_vm4 = vcmask 891904   ;;  %vm191_vm5 = vcmask 883712   ;;  %vm221_vm6 = vcmask 752640  }
  0x2b   :  { %417 = vmatprep.mubr.f32.mxu0 %v722_v9  ;;  %488 = vmatprep.mubr.f32.mxu1 %v722_v9  ;;  %vm251_vm7 = vcmask 744448   ;;  %vm281_vm8 = vcmask 736256   ;;  %vm87_vm9 = vcmask 64516   ;;  %vm334_vm10 = vcmask 1043456   ;;  %s579_s12 = sshll.u32 %s723_s11, 4  ;;  %s580_s12 = int_to_ptr.vmem [resolvable:$true] %s579_s12 }
  0x2c   :  { %vm330_vm11 = vcmask 293888   ;;  %vm571_vm12 = vcmask 64512   ;;  %s684_s13 = scalar_lea.vmem %s580_s12, 768  ;;  %p689_p3 = scmp.lt.s32.totalorder %s580_s12, %s580_s12 }
  0x2d   :  { %p685_p2 = scmp.ne.s32.totalorder %s580_s12, %s684_s13  ;;  %p690_p4 = scmp.lt.s32.totalorder %s684_s13, %s684_s13 }
  0x2e   :  { %62 = vrot.lane.b32.xlu0 %v56_v5, %s715_s5  ;;  %123 = vrot.lane.b32.xlu1 %v56_v5, %s716_s1 }
  0x2f   :  { %p691_p5 = por %p690_p4, %p689_p3 }
  0x31   :  { %p692_p6 = pnand %p691_p5, %p685_p2 }
  0x32   :  { %58 = vrot.lane.b32.xlu0 %v55_v6, %s715_s5  ;;  %89 = vrot.lane.b32.xlu1 %v36_v1, %s714_s4 }
  0x36   :  { %119 = vrot.lane.b32.xlu0 %v55_v6, %s716_s1  ;;  %151 = vrot.lane.b32.xlu1 %v42_v3, %s717_s6 }
  0x3a   :  { %153 = vrot.lane.b32.xlu0 %v763_v0, %s717_s6  ;;  %181 = vrot.lane.b32.xlu1 %v36_v1, %s718_s7 }
  0x3e   :  { %183 = vrot.lane.b32.xlu0 %v56_v5, %s718_s7  ;;  %211 = vrot.lane.b32.xlu1 %v42_v3, %s719_s8 }
  0x42   :  { %213 = vrot.lane.b32.xlu0 %v763_v0, %s719_s8  ;;  %241 = vrot.lane.b32.xlu1 %v36_v1, %s720_s9 }
  0x46   :  { %243 = vrot.lane.b32.xlu0 %v56_v5, %s720_s9  ;;  %149 = vrot.lane.b32.xlu1 %v36_v1, %s717_s6 }
  0x4a   :  { %179 = vrot.lane.b32.xlu0 %v55_v6, %s718_s7  ;;  %209 = vrot.lane.b32.xlu1 %v36_v1, %s719_s8 }
  0x4e   :  { %239 = vrot.lane.b32.xlu0 %v55_v6, %s720_s9  ;;  %64 = vrot.lane.b32.xlu1 %v763_v0, %s715_s5 }
  0x52   :  { %66 = vrot.lane.b32.xlu0 %v57_v7, %s715_s5  ;;  %95 = vrot.lane.b32.xlu1 %v43_v4, %s714_s4 }
  0x56   :  { %97 = vrot.lane.b32.xlu0 %v765_v2, %s714_s4  ;;  %125 = vrot.lane.b32.xlu1 %v763_v0, %s716_s1 }
  0x5a   :  { %127 = vrot.lane.b32.xlu0 %v57_v7, %s716_s1  ;;  %271 = vrot.lane.b32.xlu1 %v42_v3, %s721_s10 }
  0x5e   :  { %273 = vrot.lane.b32.xlu0 %v763_v0, %s721_s10  ;;  %68 = vrot.lane.b32.xlu1 %v765_v2, %s715_s5 }
  0x62   :  { %99 = vrot.lane.b32.xlu0 %v44_v8, %s714_s4  ;;  %129 = vrot.lane.b32.xlu1 %v765_v2, %s716_s1 }
  0x66   :  { %269 = vrot.lane.b32.xlu0 %v36_v1, %s721_s10  ;;  %155 = vrot.lane.b32.xlu1 %v43_v4, %s717_s6 }
  0x6a   :  { %157 = vrot.lane.b32.xlu0 %v765_v2, %s717_s6  ;;  %185 = vrot.lane.b32.xlu1 %v763_v0, %s718_s7 }
  0x6e   :  { %187 = vrot.lane.b32.xlu0 %v57_v7, %s718_s7  ;;  %215 = vrot.lane.b32.xlu1 %v43_v4, %s719_s8 }
  0x72   :  { %217 = vrot.lane.b32.xlu0 %v765_v2, %s719_s8  ;;  %245 = vrot.lane.b32.xlu1 %v763_v0, %s720_s9 }
  0x76   :  { %247 = vrot.lane.b32.xlu0 %v57_v7, %s720_s9  ;;  %159 = vrot.lane.b32.xlu1 %v44_v8, %s717_s6 }
  0x7a   :  { %189 = vrot.lane.b32.xlu0 %v765_v2, %s718_s7  ;;  %219 = vrot.lane.b32.xlu1 %v44_v8, %s719_s8 }
  0x7e   :  { %249 = vrot.lane.b32.xlu0 %v765_v2, %s720_s9  ;;  %275 = vrot.lane.b32.xlu1 %v43_v4, %s721_s10 }
  0x82   :  { %277 = vrot.lane.b32.xlu0 %v765_v2, %s721_s10  ;;  %279 = vrot.lane.b32.xlu1 %v44_v8, %s721_s10 }
  0x98   :  { %v838_v10 = vpop.permute.xlu1 %93  ;;  %v61_v11 = vpop.permute.xlu0 %60 }
  0x9c   :  { %v122_v12 = vpop.permute.xlu0 %121  ;;  %v92_v13 = vpop.permute.xlu1 %91 }
  0x9d   :  { %v103_v14 = vsel %vm101_vm1, %v92_v13, %v838_v10 }
  0x9e   :  { %114 = vst [vmem:[#allocation2 + $0x38] sm:$0xf] %v103_v14 }
  0xa0   :  { %v63_v15 = vpop.permute.xlu0 %62  ;;  %v842_v16 = vpop.permute.xlu1 %123 }
  0xa1   :  { %v72_v17 = vsel %vm70_vm2, %v61_v11, %v63_v15  ;;  %v133_v18 = vsel %vm131_vm3, %v122_v12, %v842_v16 }
  0xa2   :  { %83 = vst [vmem:[#allocation2 + $0x8] sm:$0xf0] %v72_v17  ;;  %144 = vst [vmem:[#allocation2 + $0x38] sm:$0xf0] %v133_v18 }
  0xa4   :  { %v59_v19 = vpop.permute.xlu0 %58  ;;  %v90_v20 = vpop.permute.xlu1 %89 }
  0xa5   :  { %v71_v21 = vsel %vm70_vm2, %v59_v19, %v61_v11  ;;  %v102_v22 = vsel %vm101_vm1, %v90_v20, %v92_v13 }
  0xa6   :  { %82 = vst [vmem:[#allocation2] sm:$0xf0] %v71_v21  ;;  %113 = vst [vmem:[#allocation2 + $0x30] sm:$0xf] %v102_v22 }
  0xa8   :  { %v120_v23 = vpop.permute.xlu0 %119  ;;  %v152_v24 = vpop.permute.xlu1 %151 }
  0xa9   :  { %v132_v25 = vsel %vm131_vm3, %v120_v23, %v122_v12  ;;  %v301_v26 = vld [vmem:[#allocation2 + $0x8] sm:$0xff]  ;;  %v307_v27 = vld [vmem:[#allocation2 + $0x38] sm:$0xff] }
  0xaa   :  { %143 = vst [vmem:[#allocation2 + $0x30] sm:$0xf0] %v132_v25  ;;  %v598_v28 = vpack.c.bf16 %v307_v27, %v301_v26 }
  0xac   :  { %v850_v29 = vpop.permute.xlu0 %153  ;;  %v182_v30 = vpop.permute.xlu1 %181  ;;  %599 = vmatprep.subr.bf16.mxu0 %v598_v28 }
  0xad   :  { %v163_v31 = vsel %vm161_vm4, %v152_v24, %v850_v29  ;;  %v300_v35 = vld [vmem:[#allocation2] sm:$0xff] }
  0xae   :  { %174 = vst [vmem:[#allocation2 + $0x68] sm:$0xf] %v163_v31 }
  0xb0   :  { %v854_v32 = vpop.permute.xlu0 %183  ;;  %v212_v33 = vpop.permute.xlu1 %211 }
  0xb1   :  { %v193_v34 = vsel %vm191_vm5, %v182_v30, %v854_v32  ;;  %v306_v36 = vld [vmem:[#allocation2 + $0x30] sm:$0xff] }
  0xb2   :  { %204 = vst [vmem:[#allocation2 + $0x68] sm:$0xf0] %v193_v34  ;;  %v600_v37 = vpack.c.bf16 %v306_v36, %v300_v35  ;;  %v895_v36 = vld [vmem:[#allocation6] sm:$0xff] }
  0xb4   :  { %v858_v38 = vpop.permute.xlu0 %213  ;;  %v242_v39 = vpop.permute.xlu1 %241  ;;  %601 = vmatpush1.bf16.msra.mxu0 %v600_v37 }
  0xb5   :  { %v223_v40 = vsel %vm221_vm6, %v212_v33, %v858_v38 }
  0xb6   :  { %234 = vst [vmem:[#allocation2 + $0x98] sm:$0xf] %v223_v40 }
  0xb8   :  { %v862_v41 = vpop.permute.xlu0 %243  ;;  %v150_v42 = vpop.permute.xlu1 %149 }
  0xb9   :  { %v253_v43 = vsel %vm251_vm7, %v242_v39, %v862_v41  ;;  %v162_v44 = vsel %vm161_vm4, %v150_v42, %v152_v24  ;;  %v313_v53 = vld [vmem:[#allocation2 + $0x68] sm:$0xff] }
  0xba   :  { %264 = vst [vmem:[#allocation2 + $0x98] sm:$0xf0] %v253_v43  ;;  %173 = vst [vmem:[#allocation2 + $0x60] sm:$0xf] %v162_v44 }
  0xbc   :  { %v180_v45 = vpop.permute.xlu0 %179  ;;  %v210_v46 = vpop.permute.xlu1 %209 }
  0xbd   :  { %v192_v47 = vsel %vm191_vm5, %v180_v45, %v182_v30  ;;  %v222_v48 = vsel %vm221_vm6, %v210_v46, %v212_v33 }
  0xbe   :  { %203 = vst [vmem:[#allocation2 + $0x60] sm:$0xf0] %v192_v47  ;;  %233 = vst [vmem:[#allocation2 + $0x90] sm:$0xf] %v222_v48 }
  0xc0   :  { %v240_v49 = vpop.permute.xlu0 %239  ;;  %v65_v50 = vpop.permute.xlu1 %64 }
  0xc1   :  { %v252_v51 = vsel %vm251_vm7, %v240_v49, %v242_v39  ;;  %v73_v52 = vsel %vm70_vm2, %v63_v15, %v65_v50  ;;  %v319_v54 = vld [vmem:[#allocation2 + $0x98] sm:$0xff] }
  0xc2   :  { %263 = vst [vmem:[#allocation2 + $0x90] sm:$0xf0] %v252_v51  ;;  %84 = vst [vmem:[#allocation2 + $0x10] sm:$0xf0] %v73_v52  ;;  %v602_v55 = vpack.c.bf16 %v319_v54, %v313_v53 }
  0xc4   :  { %v67_v56 = vpop.permute.xlu0 %66  ;;  %v96_v57 = vpop.permute.xlu1 %95  ;;  %603 = vmatprep.subr.bf16.mxu0 %v602_v55 }
  0xc5   :  { %v74_v58 = vsel %vm70_vm2, %v65_v50, %v67_v56  ;;  %v104_v59 = vsel %vm101_vm1, %v838_v10, %v96_v57  ;;  %v312_v0 = vld [vmem:[#allocation2 + $0x60] sm:$0xff] }
  0xc6   :  { %85 = vst [vmem:[#allocation2 + $0x18] sm:$0xf0] %v74_v58  ;;  %115 = vst [vmem:[#allocation2 + $0x40] sm:$0xf] %v104_v59 }
  0xc8   :  { %v98_v60 = vpop.permute.xlu0 %97  ;;  %v126_v61 = vpop.permute.xlu1 %125 }
  0xc9   :  { %v105_v62 = vsel %vm101_vm1, %v96_v57, %v98_v60  ;;  %v134_v63 = vsel %vm131_vm3, %v842_v16, %v126_v61  ;;  %v318_v1 = vld [vmem:[#allocation2 + $0x90] sm:$0xff] }
  0xca   :  { %116 = vst [vmem:[#allocation2 + $0x48] sm:$0xf] %v105_v62  ;;  %145 = vst [vmem:[#allocation2 + $0x40] sm:$0xf0] %v134_v63  ;;  %v604_v2 = vpack.c.bf16 %v318_v1, %v312_v0  ;;  %v302_v19 = vld [vmem:[#allocation2 + $0x10] sm:$0xff] }
  0xcc   :  { %v128_v3 = vpop.permute.xlu0 %127  ;;  %v272_v4 = vpop.permute.xlu1 %271  ;;  %605 = vmatpush1.bf16.msra.mxu0 %v604_v2 }
  0xcd   :  { %v135_v5 = vsel %vm131_vm3, %v126_v61, %v128_v3  ;;  %v303_v16 = vld [vmem:[#allocation2 + $0x18] sm:$0xff] }
  0xce   :  { %146 = vst [vmem:[#allocation2 + $0x48] sm:$0xf0] %v135_v5 }
  0xd0   :  { %v878_v6 = vpop.permute.xlu0 %273  ;;  %v69_v7 = vpop.permute.xlu1 %68 }
  0xd1   :  { %v283_v8 = vsel %vm281_vm8, %v272_v4, %v878_v6  ;;  %v75_v10 = vsel %vm70_vm2, %v67_v56, %v69_v7  ;;  %88 = vst.msk [vmem:[#allocation2 + $0x28] sm:$0xf0] %vm87_vm9, %v69_v7  ;;  %v308_v13 = vld [vmem:[#allocation2 + $0x40] sm:$0xff] }
  0xd2   :  { %294 = vst [vmem:[#allocation2 + $0xc8] sm:$0xf] %v283_v8  ;;  %86 = vst [vmem:[#allocation2 + $0x20] sm:$0xf0] %v75_v10  ;;  %v608_v20 = vpack.c.bf16 %v308_v13, %v302_v19 }
  0xd4   :  { %v100_v11 = vpop.permute.xlu0 %99  ;;  %v130_v12 = vpop.permute.xlu1 %129 }
  0xd5   :  { %v106_v14 = vsel %vm101_vm1, %v98_v60, %v100_v11  ;;  %118 = vst.msk [vmem:[#allocation2 + $0x58] sm:$0xf] %vm53_vm0, %v100_v11  ;;  %v136_v15 = vsel %vm131_vm3, %v128_v3, %v130_v12  ;;  %v309_v17 = vld [vmem:[#allocation2 + $0x48] sm:$0xff] }
  0xd6   :  { %148 = vst.msk [vmem:[#allocation2 + $0x58] sm:$0xf0] %vm87_vm9, %v130_v12  ;;  %117 = vst [vmem:[#allocation2 + $0x50] sm:$0xf] %v106_v14  ;;  %v606_v18 = vpack.c.bf16 %v309_v17, %v303_v16 }
  0xd7   :  { %147 = vst [vmem:[#allocation2 + $0x50] sm:$0xf0] %v136_v15 }
  0xd8   :  { %v270_v21 = vpop.permute.xlu0 %269  ;;  %607 = vmatprep.subr.bf16.mxu1 %v606_v18  ;;  %v156_v22 = vpop.permute.xlu1 %155 }
  0xd9   :  { %v282_v23 = vsel %vm281_vm8, %v270_v21, %v272_v4  ;;  %v164_v24 = vsel %vm161_vm4, %v850_v29, %v156_v22  ;;  %609 = vmatpush1.bf16.msra.mxu1 %v608_v20  ;;  %v325_v25 = vld [vmem:[#allocation2 + $0xc8] sm:$0xf]  ;;  %v304_v43 = vld [vmem:[#allocation2 + $0x20] sm:$0xff] }
  0xda   :  { %293 = vst [vmem:[#allocation2 + $0xc0] sm:$0xf] %v282_v23  ;;  %175 = vst [vmem:[#allocation2 + $0x70] sm:$0xf] %v164_v24  ;;  %589 = vmatprep.subr.msk.mxu0 %vm334_vm10, %v325_v25  ;;  %v305_v29 = vld [vmem:[#allocation2 + $0x28] sm:$0xff] }
  0xdc   :  { %v158_v26 = vpop.permute.xlu0 %157  ;;  %v186_v27 = vpop.permute.xlu1 %185 }
  0xdd   :  { %v165_v28 = vsel %vm161_vm4, %v156_v22, %v158_v26  ;;  %v194_v30 = vsel %vm191_vm5, %v854_v32, %v186_v27  ;;  %v311_v31 = vld [vmem:[#allocation2 + $0x58] sm:$0xff] }
  0xde   :  { %176 = vst [vmem:[#allocation2 + $0x78] sm:$0xf] %v165_v28  ;;  %205 = vst [vmem:[#allocation2 + $0x70] sm:$0xf0] %v194_v30  ;;  %v310_v33 = vld [vmem:[#allocation2 + $0x50] sm:$0xff]  ;;  %v614_v42 = vpack.c.bf16 %v311_v31, %v305_v29 }
  0xdf   :  { %v616_v32 = vpack.c.bf16 %v310_v33, %v304_v43 }
  0xe0   :  { %v188_v34 = vpop.permute.xlu0 %187  ;;  %v216_v35 = vpop.permute.xlu1 %215 }
  0xe1   :  { %v195_v37 = vsel %vm191_vm5, %v186_v27, %v188_v34  ;;  %v224_v39 = vsel %vm221_vm6, %v858_v38, %v216_v35  ;;  %v324_v40 = vld [vmem:[#allocation2 + $0xc0] sm:$0xf] }
  0xe2   :  { %206 = vst [vmem:[#allocation2 + $0x78] sm:$0xf0] %v195_v37  ;;  %235 = vst [vmem:[#allocation2 + $0xa0] sm:$0xf] %v224_v39  ;;  %590 = vmatpush1.msk.msra.mxu0 %vm334_vm10, %v324_v40 }
  0xe3   :  { %615 = vmatprep.subr.bf16.mxu0 %v614_v42  ;;  %591 = vmatmul.mubr.msk.f32.vlgmr.msra.gmra.mrb[0].mxu0 %vm330_vm11, %v895_v36 }
  0xe4   :  { %v218_v44 = vpop.permute.xlu0 %217  ;;  %v246_v45 = vpop.permute.xlu1 %245  ;;  %617 = vmatpush1.bf16.msra.mxu0 %v616_v32  ;;  %559 = vmatprep.mubr.f32.mxu0 %v722_v9 }
  0xe5   :  { %v225_v46 = vsel %vm221_vm6, %v216_v35, %v218_v44  ;;  %v254_v38 = vsel %vm251_vm7, %v862_v41, %v246_v45  ;;  %v314_v61 = vld [vmem:[#allocation2 + $0x70] sm:$0xff] }
  0xe6   :  { %236 = vst [vmem:[#allocation2 + $0xa8] sm:$0xf] %v225_v46  ;;  %265 = vst [vmem:[#allocation2 + $0xa0] sm:$0xf0] %v254_v38 }
  0xe8   :  { %v248_v47 = vpop.permute.xlu0 %247  ;;  %v160_v48 = vpop.permute.xlu1 %159 }
  0xe9   :  { %v255_v49 = vsel %vm251_vm7, %v246_v45, %v248_v47  ;;  %v166_v50 = vsel %vm161_vm4, %v158_v26, %v160_v48  ;;  %178 = vst.msk [vmem:[#allocation2 + $0x88] sm:$0xf] %vm53_vm0, %v160_v48  ;;  %v315_v58 = vld [vmem:[#allocation2 + $0x78] sm:$0xff] }
  0xea   :  { %266 = vst [vmem:[#allocation2 + $0xa8] sm:$0xf0] %v255_v49  ;;  %177 = vst [vmem:[#allocation2 + $0x80] sm:$0xf] %v166_v50 }
  0xec   :  { %v190_v51 = vpop.permute.xlu0 %189  ;;  %v220_v52 = vpop.permute.xlu1 %219 }
  0xed   :  { %v196_v9 = vsel %vm191_vm5, %v188_v34, %v190_v51  ;;  %208 = vst.msk [vmem:[#allocation2 + $0x88] sm:$0xf0] %vm87_vm9, %v190_v51  ;;  %v226_v41 = vsel %vm221_vm6, %v218_v44, %v220_v52  ;;  %v320_v55 = vld [vmem:[#allocation2 + $0xa0] sm:$0xff] }
  0xee   :  { %238 = vst.msk [vmem:[#allocation2 + $0xb8] sm:$0xf] %vm53_vm0, %v220_v52  ;;  %207 = vst [vmem:[#allocation2 + $0x80] sm:$0xf0] %v196_v9  ;;  %v612_v62 = vpack.c.bf16 %v320_v55, %v314_v61 }
  0xef   :  { %237 = vst [vmem:[#allocation2 + $0xb0] sm:$0xf] %v226_v41 }
  0xf0   :  { %v250_v53 = vpop.permute.xlu0 %249  ;;  %v276_v54 = vpop.permute.xlu1 %275 }
  0xf1   :  { %v256_v56 = vsel %vm251_vm7, %v248_v47, %v250_v53  ;;  %268 = vst.msk [vmem:[#allocation2 + $0xb8] sm:$0xf0] %vm87_vm9, %v250_v53  ;;  %v284_v57 = vsel %vm281_vm8, %v878_v6, %v276_v54  ;;  %v321_v59 = vld [vmem:[#allocation2 + $0xa8] sm:$0xff] }
  0xf2   :  { %267 = vst [vmem:[#allocation2 + $0xb0] sm:$0xf0] %v256_v56  ;;  %295 = vst [vmem:[#allocation2 + $0xd0] sm:$0xf] %v284_v57  ;;  %v610_v60 = vpack.c.bf16 %v321_v59, %v315_v58 }
  0xf4   :  { %v278_v63 = vpop.permute.xlu0 %277  ;;  %611 = vmatprep.subr.bf16.mxu1 %v610_v60  ;;  %v280_v0 = vpop.permute.xlu1 %279  ;;  %v317_v3 = vld [vmem:[#allocation2 + $0x88] sm:$0xff] }
  0xf5   :  { %v285_v1 = vsel %vm281_vm8, %v276_v54, %v278_v63  ;;  %613 = vmatpush1.bf16.msra.mxu1 %v612_v62  ;;  %v286_v2 = vsel %vm281_vm8, %v278_v63, %v280_v0  ;;  %298 = vst.msk [vmem:[#allocation2 + $0xe8] sm:$0xf] %vm53_vm0, %v280_v0  ;;  %v316_v6 = vld [vmem:[#allocation2 + $0x80] sm:$0xff] }
  0xf6   :  { %296 = vst [vmem:[#allocation2 + $0xd8] sm:$0xf] %v285_v1  ;;  %297 = vst [vmem:[#allocation2 + $0xe0] sm:$0xf] %v286_v2 }
  0xf8   :  { %v323_v4 = vld [vmem:[#allocation2 + $0xb8] sm:$0xff] }
  0xf9   :  { %v618_v5 = vpack.c.bf16 %v323_v4, %v317_v3  ;;  %v322_v7 = vld [vmem:[#allocation2 + $0xb0] sm:$0xff] }
  0xfa   :  { %v620_v8 = vpack.c.bf16 %v322_v7, %v316_v6  ;;  %v326_v13 = vld [vmem:[#allocation2 + $0xd0] sm:$0xf] }
  0xfb   :  { %619 = vmatprep.subr.bf16.mxu0 %v618_v5 }
  0xfc   :  { %621 = vmatpush1.bf16.msra.mxu0 %v620_v8  ;;  %v329_v10 = vld [vmem:[#allocation2 + $0xe8] sm:$0xf] }
  0xfd   :  { %v327_v11 = vld [vmem:[#allocation2 + $0xd8] sm:$0xf]  ;;  %595 = vmatprep.subr.msk.mxu0 %vm334_vm10, %v329_v10  ;;  %v328_v12 = vld [vmem:[#allocation2 + $0xe0] sm:$0xf] }
  0xfe   :  { %592 = vmatprep.subr.msk.mxu1 %vm334_vm10, %v327_v11 }
  0xff   :  { %593 = vmatpush1.msk.msra.mxu1 %vm334_vm10, %v326_v13 }
 0x100   :  { %594 = vmatmul.mubr.msk.f32.vlgmr.msra.gmra.mrb[0].mxu1 %vm330_vm11, %v895_v36  ;;  %596 = vmatpush1.msk.msra.mxu0 %vm334_vm10, %v328_v12 }
 0x101   :  { %597 = vmatmul.mubr.msk.f32.vlgmr.msra.gmra.mrb[2].mxu0 %vm330_vm11, %v895_v36 }
 0x1b6   :  { %v419_v14 = vpop.f32.mrb[0].mxu0 }
 0x1b7   :  { %566 = vst [vmem:[#allocation8] sm:$0xff] %v419_v14  ;;  %v421_v15 = vpop.f32.mrb[1].mxu0 }
 0x1b8   :  { %567 = vst [vmem:[#allocation8 + $0x8] sm:$0xff] %v421_v15 }
 0x1d3   :  { %v490_v16 = vpop.f32.mrb[0].mxu1 }
 0x1d4   :  { %568 = vst [vmem:[#allocation8 + $0x10] sm:$0xff] %v490_v16  ;;  %v492_v17 = vpop.f32.mrb[1].mxu1  ;;  %v561_v18 = vpop.f32.mrb[2].mxu0 }
 0x1d5   :  { %569 = vst [vmem:[#allocation8 + $0x18] sm:$0xff] %v492_v17  ;;  %570 = vst [vmem:[#allocation8 + $0x20] sm:$0xff] %v561_v18  ;;  %v563_v19 = vpop.f32.mrb[3].mxu0 }
 0x1d6   :  { %572 = vst.msk [vmem:[#allocation8 + $0x28] sm:$0xff] %vm571_vm12, %v563_v19 }
 0x1d7   :  { %695 = shalt.err (!%p692_p6)
}
 0x1d8   :  { %s696_s16 = scalar_lea.hbm %s943_s2, 768 }
 0x1d9   :  { %p697_p7 = scmp.ne.s32.totalorder %s943_s2, %s696_s16  ;;  %p700_p8 = scmp.lt.u32.totalorder %s696_s16, %s943_s2 }
 0x1db   :  { %p702_p9 = pnand %p700_p8, %p697_p7 }
 0x1dd   :  { %705 = shalt.err (!%p702_p9)
}
 0x1de   :  { %582 = dma.vmem_to_hbm [thread:$0]  %s580_s12, 768, %s943_s2, [#allocation5]  }
 0x1df   :  { %710 = dma.done.wait [#allocation5], 768  }
 0x1e0   :  { %711 = vsyncadd [#allocation5], 4294966528 }
 0x1e1   :  { %586 = vsyncpa [#allocation4], 1 }
 0x1e2   :  { %587 = vsyncpa [#allocation7], 1 }
 0x1e3   :  { %588 = vsyncpa [#allocation5], 1 }

</bundles_post_ra>
